<compile_context>
chip_gen: v7x
topology: tpu7x:2x2x1
jax: 0.10.0
libtpu: 0.0.40
codegen_flags: <defaults>
</compile_context>

<pallas_src>
import functools

import jax
import jax.numpy as jnp
from jax.experimental import pallas as pl
from jax.experimental.pallas import tpu as pltpu

LEAKY_SLOPE = 0.01  # torch.nn.LeakyReLU default negative_slope
LANE = 128
MAX_BATCH_TILE = 2048


def _round_up(x, m):
    return (x + m - 1) // m * m


def _leaky_relu(x):
    return jnp.where(x > 0, x, LEAKY_SLOPE * x)


def _tensorcores_per_chip():
    """Best-effort: v7x has 2 TensorCores per chip; assume 1 otherwise."""
    try:
        kind = jax.devices()[0].device_kind.lower()
    except Exception:
        return 1
    return 2 if "v7" in kind else 1


def generator_kernel(x_ref, w1_ref, b1_ref, w2_ref, b2_ref, w3_ref, b3_ref,
                     o_ref, *, out_dim):
    """Fused 3-layer MLP on one (tb, *) batch tile; weights stay VMEM-resident."""
    # Layer 1: MXU dot in the bf16 compute dtype, f32 accumulate + elementwise.
    h = jnp.dot(x_ref[...], w1_ref[...], preferred_element_type=jnp.float32)
    h = _leaky_relu(h + b1_ref[...])

    # Layer 2.
    h = jnp.dot(h.astype(w2_ref.dtype), w2_ref[...],
                preferred_element_type=jnp.float32)
    h = _leaky_relu(h + b2_ref[...])

    # Layer 3 (no output activation). Padded weight/bias columns are exactly 0,
    # so only the first `out_dim` lanes are real -> store just those columns
    # (narrow block) to keep the HBM writeback at batch*out_dim elements.
    out = jnp.dot(h.astype(w3_ref.dtype), w3_ref[...],
                  preferred_element_type=jnp.float32)
    out = out + b3_ref[...]
    o_ref[...] = out[:, :out_dim].astype(o_ref.dtype)


def prepare_generator_params(w1, b1, w2, b2, w3, b3,
                             compute_dtype=jnp.bfloat16):
    """Pad weights/biases to lane width and cast ONCE (hoisted out of forward).

    Zero padding keeps the math exact: padded hidden columns stay 0 through
    LeakyReLU and multiply against zero weight rows in the next layer.
    """
    latent_dim, h1 = w1.shape
    h2 = w2.shape[1]
    out_dim = w3.shape[1]
    h1p, h2p, outp = (_round_up(d, LANE) for d in (h1, h2, out_dim))

    def pad2(a, rows, cols):
        if a.ndim == 1:
            a = a.reshape(1, -1)
        return jnp.pad(a, ((0, rows - a.shape[0]), (0, cols - a.shape[1])))

    params = (
        pad2(w1, latent_dim, h1p).astype(compute_dtype),
        pad2(b1, 1, h1p).astype(jnp.float32),
        pad2(w2, h1p, h2p).astype(compute_dtype),
        pad2(b2, 1, h2p).astype(jnp.float32),
        pad2(w3, h2p, outp).astype(compute_dtype),
        pad2(b3, 1, outp).astype(jnp.float32),
    )
    return params, out_dim


@functools.partial(jax.jit, static_argnames=("out_dim",))
def generator_forward(x, params, out_dim):
    w1p, b1p, w2p, b2p, w3p, b3p = params
    batch, latent_dim = x.shape
    h1p, h2p, outp = w1p.shape[1], w2p.shape[1], w3p.shape[1]
    compute_dtype = w1p.dtype

    # Batch tiling: pad only to a sublane multiple, then pick the fewest grid
    # steps whose tile is <= MAX_BATCH_TILE. Force >= 2 steps on v7x (2 TCs)
    # so the "parallel" axis can shard across both TensorCores.
    batch8 = _round_up(batch, 8)
    min_steps = _tensorcores_per_chip() if batch8 >= 16 else 1
    n_steps = max(pl.cdiv(batch8, MAX_BATCH_TILE), min_steps)
    tb = _round_up(pl.cdiv(batch8, n_steps), 8)
    batch_pad = n_steps * tb

    xp = jnp.pad(x, ((0, batch_pad - batch), (0, 0))).astype(compute_dtype)

    # Advisory cost estimate using the padded work the kernel actually does.
    flops = 2 * batch_pad * (latent_dim * h1p + h1p * h2p + h2p * outp)
    bytes_accessed = (
        sum(int(a.size) * a.dtype.itemsize
            for a in (xp, w1p, b1p, w2p, b2p, w3p, b3p))
        + batch_pad * out_dim * 4
    )

    out_padded = pl.pallas_call(
        functools.partial(generator_kernel, out_dim=out_dim),
        out_shape=jax.ShapeDtypeStruct((batch_pad, out_dim), jnp.float32),
        grid=(n_steps,),
        in_specs=[
            pl.BlockSpec((tb, latent_dim), lambda i: (i, 0)),   # x tile streams
            pl.BlockSpec((latent_dim, h1p), lambda i: (0, 0)),  # weights resident
            pl.BlockSpec((1, h1p), lambda i: (0, 0)),
            pl.BlockSpec((h1p, h2p), lambda i: (0, 0)),
            pl.BlockSpec((1, h2p), lambda i: (0, 0)),
            pl.BlockSpec((h2p, outp), lambda i: (0, 0)),
            pl.BlockSpec((1, outp), lambda i: (0, 0)),
        ],
        out_specs=pl.BlockSpec((tb, out_dim), lambda i: (i, 0)),
        compiler_params=pltpu.CompilerParams(
            dimension_semantics=("parallel",),  # shard batch tiles across TCs
        ),
        cost_estimate=pl.CostEstimate(
            flops=flops, transcendentals=0, bytes_accessed=bytes_accessed
        ),
    )(xp, w1p, b1p, w2p, b2p, w3p, b3p)

    return out_padded if batch_pad == batch else out_padded[:batch]


def init_linear_params(key, in_features, out_features):
    """Deterministic init mimicking torch.nn.Linear: U(-1/sqrt(in), 1/sqrt(in))."""
    kw, kb = jax.random.split(key)
    bound = 1.0 / jnp.sqrt(jnp.float32(in_features))
    w = jax.random.uniform(kw, (in_features, out_features), jnp.float32, -bound, bound)
    b = jax.random.uniform(kb, (out_features,), jnp.float32, -bound, bound)
    return w, b


def reference_forward(x, w1, b1, w2, b2, w3, b3):
    h = jnp.dot(x, w1) + b1
    h = jnp.where(h > 0, h, LEAKY_SLOPE * h)
    h = jnp.dot(h, w2) + b2
    h = jnp.where(h > 0, h, LEAKY_SLOPE * h)
    return jnp.dot(h, w3) + b3


if __name__ == "__main__":
    latent_dim = 16

    root = jax.random.PRNGKey(0)
    kx1, kx2, k1, k2, k3 = jax.random.split(root, 5)

    w1, b1 = init_linear_params(k1, latent_dim, 64)
    w2, b2 = init_linear_params(k2, 64, 32)
    w3, b3 = init_linear_params(k3, 32, 1)

    # Pad/cast weights once (bf16 MXU inputs on all TPU generations).
    params, out_dim = prepare_generator_params(w1, b1, w2, b2, w3, b3,
                                               compute_dtype=jnp.bfloat16)
    tol = 5e-2  # bf16 input quantization; accumulation stays f32

    # Small demo batch (single grid step).
    x_small = jax.random.normal(kx1, (8, latent_dim), jnp.float32)
    out_small = jax.block_until_ready(generator_forward(x_small, params, out_dim))
    ref_small = reference_forward(x_small, w1, b1, w2, b2, w3, b3)
    assert out_small.shape == (8, 1), out_small.shape
    assert jnp.allclose(out_small, ref_small, atol=tol, rtol=tol), \
        "small-batch mismatch vs JAX reference"

    # Ragged multi-tile batch: exercises the tiled grid + sublane-only padding.
    x_big = jax.random.normal(kx2, (2500, latent_dim), jnp.float32)
    out_big = jax.block_until_ready(generator_forward(x_big, params, out_dim))
    ref_big = reference_forward(x_big, w1, b1, w2, b2, w3, b3)
    assert out_big.shape == (2500, 1), out_big.shape
    assert jnp.allclose(out_big, ref_big, atol=tol, rtol=tol), \
        "large-batch mismatch vs JAX reference"

    print("KERNEL_OK")
</pallas_src>

<mosaic_0001>
module attributes {stable_mosaic.version = 11 : i64} {
  func.func @generator_kernel(%arg0: i32, %arg1: memref<8x16xbf16, #tpu.memory_space<vmem>>, %arg2: memref<16x128xbf16, #tpu.memory_space<vmem>>, %arg3: memref<1x128xf32, #tpu.memory_space<vmem>>, %arg4: memref<128x128xbf16, #tpu.memory_space<vmem>>, %arg5: memref<1x128xf32, #tpu.memory_space<vmem>>, %arg6: memref<128x128xbf16, #tpu.memory_space<vmem>>, %arg7: memref<1x128xf32, #tpu.memory_space<vmem>>, %arg8: memref<8x1xf32, #tpu.memory_space<vmem>>) attributes {dimension_semantics = [#tpu.dimension_semantics<parallel>], iteration_bounds = array<i64: 1>, scalar_prefetch = 0 : i64, scratch_operands = 0 : i64, tpu.core_type = #tpu.core_type<tc>, window_params = [{transform_indices = @transform_0, window_bounds = array<i64: 8, 16>}, {pipeline_mode = #tpu.pipeline_mode<synchronous>, transform_indices = @transform_1, window_bounds = array<i64: 16, 128>}, {pipeline_mode = #tpu.pipeline_mode<synchronous>, transform_indices = @transform_2, window_bounds = array<i64: 1, 128>}, {pipeline_mode = #tpu.pipeline_mode<synchronous>, transform_indices = @transform_3, window_bounds = array<i64: 128, 128>}, {pipeline_mode = #tpu.pipeline_mode<synchronous>, transform_indices = @transform_4, window_bounds = array<i64: 1, 128>}, {pipeline_mode = #tpu.pipeline_mode<synchronous>, transform_indices = @transform_5, window_bounds = array<i64: 128, 128>}, {pipeline_mode = #tpu.pipeline_mode<synchronous>, transform_indices = @transform_6, window_bounds = array<i64: 1, 128>}, {transform_indices = @transform_7, window_bounds = array<i64: 8, 1>}]} {
    %c0 = arith.constant 0 : index
    %c0_0 = arith.constant 0 : index
    %0 = vector.load %arg1[%c0, %c0_0] : memref<8x16xbf16, #tpu.memory_space<vmem>>, vector<8x16xbf16>
    %c0_1 = arith.constant 0 : index
    %c0_2 = arith.constant 0 : index
    %1 = vector.load %arg2[%c0_1, %c0_2] : memref<16x128xbf16, #tpu.memory_space<vmem>>, vector<16x128xbf16>
    %cst = arith.constant dense<0.000000e+00> : vector<8x128xf32>
    %2 = tpu.matmul %0, %1, %cst {dimension_numbers = #tpu.dot_dimension_numbers<[1], [0], [0], [1], [0, 0, 1, 1], [], []>} : vector<8x16xbf16>, vector<16x128xbf16>, vector<8x128xf32> -> vector<8x128xf32>
    %c0_3 = arith.constant 0 : index
    %c0_4 = arith.constant 0 : index
    %3 = vector.load %arg3[%c0_3, %c0_4] : memref<1x128xf32, #tpu.memory_space<vmem>>, vector<1x128xf32>
    %4 = vector.broadcast %3 : vector<1x128xf32> to vector<8x128xf32>
    %5 = arith.addf %2, %4 : vector<8x128xf32>
    %cst_5 = arith.constant 0.000000e+00 : f32
    %6 = vector.broadcast %cst_5 : f32 to vector<8x128xf32>
    %7 = arith.cmpf ogt, %5, %6 : vector<8x128xf32>
    %cst_6 = arith.constant 0.00999999977 : f32
    %8 = vector.broadcast %cst_6 : f32 to vector<8x128xf32>
    %9 = arith.mulf %8, %5 : vector<8x128xf32>
    %10 = arith.select %7, %5, %9 : vector<8x128xi1>, vector<8x128xf32>
    %11 = arith.truncf %10 : vector<8x128xf32> to vector<8x128xbf16>
    %c0_7 = arith.constant 0 : index
    %c0_8 = arith.constant 0 : index
    %12 = vector.load %arg4[%c0_7, %c0_8] : memref<128x128xbf16, #tpu.memory_space<vmem>>, vector<128x128xbf16>
    %cst_9 = arith.constant dense<0.000000e+00> : vector<8x128xf32>
    %13 = tpu.matmul %11, %12, %cst_9 {dimension_numbers = #tpu.dot_dimension_numbers<[1], [0], [0], [1], [0, 0, 1, 1], [], []>} : vector<8x128xbf16>, vector<128x128xbf16>, vector<8x128xf32> -> vector<8x128xf32>
    %c0_10 = arith.constant 0 : index
    %c0_11 = arith.constant 0 : index
    %14 = vector.load %arg5[%c0_10, %c0_11] : memref<1x128xf32, #tpu.memory_space<vmem>>, vector<1x128xf32>
    %15 = vector.broadcast %14 : vector<1x128xf32> to vector<8x128xf32>
    %16 = arith.addf %13, %15 : vector<8x128xf32>
    %cst_12 = arith.constant 0.000000e+00 : f32
    %17 = vector.broadcast %cst_12 : f32 to vector<8x128xf32>
    %18 = arith.cmpf ogt, %16, %17 : vector<8x128xf32>
    %cst_13 = arith.constant 0.00999999977 : f32
    %19 = vector.broadcast %cst_13 : f32 to vector<8x128xf32>
    %20 = arith.mulf %19, %16 : vector<8x128xf32>
    %21 = arith.select %18, %16, %20 : vector<8x128xi1>, vector<8x128xf32>
    %22 = arith.truncf %21 : vector<8x128xf32> to vector<8x128xbf16>
    %c0_14 = arith.constant 0 : index
    %c0_15 = arith.constant 0 : index
    %23 = vector.load %arg6[%c0_14, %c0_15] : memref<128x128xbf16, #tpu.memory_space<vmem>>, vector<128x128xbf16>
    %cst_16 = arith.constant dense<0.000000e+00> : vector<8x128xf32>
    %24 = tpu.matmul %22, %23, %cst_16 {dimension_numbers = #tpu.dot_dimension_numbers<[1], [0], [0], [1], [0, 0, 1, 1], [], []>} : vector<8x128xbf16>, vector<128x128xbf16>, vector<8x128xf32> -> vector<8x128xf32>
    %c0_17 = arith.constant 0 : index
    %c0_18 = arith.constant 0 : index
    %25 = vector.load %arg7[%c0_17, %c0_18] : memref<1x128xf32, #tpu.memory_space<vmem>>, vector<1x128xf32>
    %26 = vector.broadcast %25 : vector<1x128xf32> to vector<8x128xf32>
    %27 = arith.addf %24, %26 : vector<8x128xf32>
    %28 = vector.extract_strided_slice %27 {offsets = [0, 0], sizes = [8, 1], strides = [1, 1]} : vector<8x128xf32> to vector<8x1xf32>
    %c0_19 = arith.constant 0 : index
    %c0_20 = arith.constant 0 : index
    %29 = vector.load %arg8[%c0_19, %c0_20] : memref<8x1xf32, #tpu.memory_space<vmem>>, vector<8x1xf32>
    tpu.vector_store %arg8[%c0_19, %c0_20], %28 {strides = array<i32>} : memref<8x1xf32, #tpu.memory_space<vmem>>, vector<8x1xf32>,
    return
  }
  func.func @transform_0(%arg0: i32) -> (i32, i32) {
    %c0_i32 = arith.constant 0 : i32
    %c0_i32_0 = arith.constant 0 : i32
    return %arg0, %c0_i32 : i32, i32
  }
  func.func @transform_1(%arg0: i32) -> (i32, i32) {
    %c0_i32 = arith.constant 0 : i32
    %c0_i32_0 = arith.constant 0 : i32
    %c0_i32_1 = arith.constant 0 : i32
    return %c0_i32, %c0_i32_0 : i32, i32
  }
  func.func @transform_2(%arg0: i32) -> (i32, i32) {
    %c0_i32 = arith.constant 0 : i32
    %c0_i32_0 = arith.constant 0 : i32
    %c0_i32_1 = arith.constant 0 : i32
    return %c0_i32, %c0_i32_0 : i32, i32
  }
  func.func @transform_3(%arg0: i32) -> (i32, i32) {
    %c0_i32 = arith.constant 0 : i32
    %c0_i32_0 = arith.constant 0 : i32
    %c0_i32_1 = arith.constant 0 : i32
    return %c0_i32, %c0_i32_0 : i32, i32
  }
  func.func @transform_4(%arg0: i32) -> (i32, i32) {
    %c0_i32 = arith.constant 0 : i32
    %c0_i32_0 = arith.constant 0 : i32
    %c0_i32_1 = arith.constant 0 : i32
    return %c0_i32, %c0_i32_0 : i32, i32
  }
  func.func @transform_5(%arg0: i32) -> (i32, i32) {
    %c0_i32 = arith.constant 0 : i32
    %c0_i32_0 = arith.constant 0 : i32
    %c0_i32_1 = arith.constant 0 : i32
    return %c0_i32, %c0_i32_0 : i32, i32
  }
  func.func @transform_6(%arg0: i32) -> (i32, i32) {
    %c0_i32 = arith.constant 0 : i32
    %c0_i32_0 = arith.constant 0 : i32
    %c0_i32_1 = arith.constant 0 : i32
    return %c0_i32, %c0_i32_0 : i32, i32
  }
  func.func @transform_7(%arg0: i32) -> (i32, i32) {
    %c0_i32 = arith.constant 0 : i32
    %c0_i32_0 = arith.constant 0 : i32
    return %arg0, %c0_i32 : i32, i32
  }
}

</mosaic_0001>

<bundles_post_ra>
// kernel: generator_forward.1
= control target key start
LH: loop header
LB: loop body
LE: loop exit
PB: predicated region body
PF: predicated region fallthrough
CT: control target
= control target key end

     0   :  { %12 = vsyncpa [#allocation3], 0  ;;  %s619_s0 = inlined_call_operand.vmem [shape: bf16[8,16], index: 0, kind: input, shape index: {}]   ;;  %s620_s1 = inlined_call_operand.vmem [shape: bf16[16,128], index: 1, kind: input, shape index: {}]   ;;  %s621_s2 = inlined_call_operand.vmem [shape: f32[1,128], index: 2, kind: input, shape index: {}]   ;;  %s622_s3 = inlined_call_operand.hbm [shape: bf16[128,128], index: 3, kind: input, shape index: {}]   ;;  %s623_s4 = inlined_call_operand.vmem [shape: f32[1,128], index: 4, kind: input, shape index: {}]   ;;  %s624_s5 = inlined_call_operand.hbm [shape: bf16[128,128], index: 5, kind: input, shape index: {}]   ;;  %s625_s6 = inlined_call_operand.vmem [shape: f32[1,128], index: 6, kind: input, shape index: {}]   ;;  %s626_s7 = inlined_call_operand.vmem [shape: f32[8,1], index: 7, kind: output, shape index: {}]  }
   0x1   :  { %13 = vsyncpa [#allocation5], 0  ;;  %s511_s24 = smov [#allocation2]   ;;  %s463_s28 = scalar_lea.hbm %s622_s3, 1024 }
   0x2   :  { %s25_s25 = sshll.u32 %s511_s24, 4  ;;  %p464_p0 = scmp.ne.s32.totalorder %s622_s3, %s463_s28  ;;  %s26_s25 = int_to_ptr.vmem [resolvable:$true] %s25_s25 }
   0x3   :  { %p467_p1 = scmp.lt.u32.totalorder %s463_s28, %s622_s3 }
   0x5   :  { %p469_p2 = pnand %p467_p1, %p464_p0 }
   0x7   :  { %472 = shalt.err (!%p469_p2)
}
   0x8   :  { %s473_s10 = scalar_lea.vmem %s26_s25, 1024  ;;  %p478_p4 = scmp.lt.s32.totalorder %s26_s25, %s26_s25 }
   0x9   :  { %p474_p3 = scmp.ne.s32.totalorder %s26_s25, %s473_s10  ;;  %p479_p5 = scmp.lt.s32.totalorder %s473_s10, %s473_s10 }
   0xb   :  { %p480_p6 = por %p479_p5, %p478_p4 }
   0xd   :  { %p481_p7 = pnand %p480_p6, %p474_p3 }
   0xf   :  { %484 = shalt.err (!%p481_p7)
}
  0x10   :  { %s512_s11 = smov 64   ;;  %s513_s12 = smov 4  }
  0x11   :  { %31 = dma.hbm_to_vmem [thread:$0]  %s622_s3, 1024, %s26_s25, [#allocation3], %s512_s11, %s512_s11, %s513_s12  }
  0x12   :  { %s514_s15 = smov [#allocation4]   ;;  %s485_s19 = scalar_lea.hbm %s624_s5, 1024 }
  0x13   :  { %s39_s16 = sshll.u32 %s514_s15, 4  ;;  %p486_p8 = scmp.ne.s32.totalorder %s624_s5, %s485_s19  ;;  %s40_s16 = int_to_ptr.vmem [resolvable:$true] %s39_s16 }
  0x14   :  { %p489_p9 = scmp.lt.u32.totalorder %s485_s19, %s624_s5 }
  0x16   :  { %p491_p10 = pnand %p489_p9, %p486_p8 }
  0x18   :  { %494 = shalt.err (!%p491_p10)
}
  0x19   :  { %s495_s24 = scalar_lea.vmem %s40_s16, 1024  ;;  %p500_p12 = scmp.lt.s32.totalorder %s40_s16, %s40_s16 }
  0x1a   :  { %p496_p11 = scmp.ne.s32.totalorder %s40_s16, %s495_s24  ;;  %p501_p13 = scmp.lt.s32.totalorder %s495_s24, %s495_s24 }
  0x1c   :  { %p502_p0 = por %p501_p13, %p500_p12 }
  0x1e   :  { %p503_p1 = pnand %p502_p0, %p496_p11 }
  0x20   :  { %506 = shalt.err (!%p503_p1)
}
  0x21   :  { %45 = dma.hbm_to_vmem [thread:$0]  %s624_s5, 1024, %s40_s16, [#allocation5], %s512_s11, %s512_s11, %s513_s12  }
  0x22   :  { %507 = dma.done.wait [#allocation3], 1024  }
  0x23   :  { %508 = vsyncadd [#allocation3], 4294966272 }
  0x24   :  { %509 = dma.done.wait [#allocation5], 1024  }
  0x25   :  { %510 = vsyncadd [#allocation5], 4294966272  ;;  %v515_v0 = vmov 0.0   ;;  %vm516_vm0 = vmmov 0   ;;  %v446_v1 = vld [vmem:[%s620_s1] sm:$0xff]   ;;  %vm71_vm1 = vcmask 130048  }
  0x26   :  { %394 = vmatprep.subr.bf16.mxu0 %v515_v0  ;;  %396 = vmatprep.mubr.msk.bf16.mxu0 %vm516_vm0, %v515_v0  ;;  %v55_v2 = vld [vmem:[%s619_s0] sm:$0xf]  ;;  %v447_v3 = vld [vmem:[#allocation2] sm:$0xff]   ;;  %v448_v4 = vld [vmem:[#allocation2 + $0x8] sm:$0xff]   ;;  %vm345_vm4 = vcmask 7168  }
  0x27   :  { %400 = vmatprep.subr.bf16.mxu1 %v515_v0  ;;  %416 = vmatprep.mubr.msk.bf16.mxu1 %vm516_vm0, %v515_v0  ;;  %v449_v5 = vld [vmem:[#allocation2 + $0x10] sm:$0xff]   ;;  %v450_v6 = vld [vmem:[#allocation2 + $0x18] sm:$0xff]   ;;  %v451_v7 = vld [vmem:[#allocation2 + $0x20] sm:$0xff]  }
  0x28   :  { %395 = vmatpush3.bf16.msra.mxu0 %v446_v1  ;;  %401 = vmatpush3.bf16.msra.mxu1 %v447_v3  ;;  %v452_v8 = vld [vmem:[#allocation2 + $0x28] sm:$0xff]   ;;  %v453_v9 = vld [vmem:[#allocation2 + $0x30] sm:$0xff]   ;;  %v454_v10 = vld [vmem:[#allocation2 + $0x38] sm:$0xff]  }
  0x29   :  { %420 = vmatprep.subr.bf16.mxu0 %v515_v0  ;;  %402 = vmatprep.subr.bf16.mxu1 %v515_v0  ;;  %v455_v11 = vld [vmem:[#allocation4] sm:$0xff]   ;;  %v456_v12 = vld [vmem:[#allocation4 + $0x8] sm:$0xff]   ;;  %v457_v13 = vld [vmem:[#allocation4 + $0x10] sm:$0xff]  }
  0x2a   :  { %v458_v14 = vld [vmem:[#allocation4 + $0x18] sm:$0xff]   ;;  %v459_v15 = vld [vmem:[#allocation4 + $0x20] sm:$0xff]   ;;  %v460_v16 = vld [vmem:[#allocation4 + $0x28] sm:$0xff]  }
  0x2b   :  { %397 = vmatmul.mubr.msk.bf16.vlgmr.msra.gmra.mrb[0].mxu0 %vm71_vm1, %v55_v2  ;;  %v353_v17 = vld [vmem:[%s621_s2] ss:$0 sm:$0xff]  ;;  %v461_v26 = vld [vmem:[#allocation4 + $0x30] sm:$0xff]  }
  0x2c   :  { %436 = vmatprep.mubr.msk.bf16.mxu0 %vm516_vm0, %v515_v0  ;;  %403 = vmatpush3.bf16.msra.mxu1 %v448_v4  ;;  %v462_v27 = vld [vmem:[#allocation4 + $0x38] sm:$0xff]  }
  0x2d   :  { %404 = vmatprep.subr.bf16.mxu1 %v515_v0  ;;  %421 = vmatpush3.bf16.msra.mxu0 %v455_v11  ;;  %v356_v28 = vld [vmem:[%s623_s4] ss:$0 sm:$0xff] }
  0x2e   :  { %422 = vmatprep.subr.bf16.mxu0 %v515_v0  ;;  %v365_v37 = vld [vmem:[%s625_s6] ss:$0 sm:$0xff] }
  0x30   :  { %405 = vmatpush3.bf16.msra.mxu1 %v449_v5 }
  0x31   :  { %406 = vmatprep.subr.bf16.mxu1 %v515_v0  ;;  %423 = vmatpush3.bf16.msra.mxu0 %v456_v12 }
  0x32   :  { %424 = vmatprep.subr.bf16.mxu0 %v515_v0 }
  0x34   :  { %407 = vmatpush3.bf16.msra.mxu1 %v450_v6 }
  0x35   :  { %408 = vmatprep.subr.bf16.mxu1 %v515_v0  ;;  %425 = vmatpush3.bf16.msra.mxu0 %v457_v13 }
  0x36   :  { %426 = vmatprep.subr.bf16.mxu0 %v515_v0 }
  0x38   :  { %409 = vmatpush3.bf16.msra.mxu1 %v451_v7 }
  0x39   :  { %410 = vmatprep.subr.bf16.mxu1 %v515_v0  ;;  %427 = vmatpush3.bf16.msra.mxu0 %v458_v14 }
  0x3a   :  { %428 = vmatprep.subr.bf16.mxu0 %v515_v0 }
  0x3c   :  { %411 = vmatpush3.bf16.msra.mxu1 %v452_v8 }
  0x3d   :  { %412 = vmatprep.subr.bf16.mxu1 %v515_v0  ;;  %429 = vmatpush3.bf16.msra.mxu0 %v459_v15 }
  0x3e   :  { %430 = vmatprep.subr.bf16.mxu0 %v515_v0 }
  0x40   :  { %413 = vmatpush3.bf16.msra.mxu1 %v453_v9 }
  0x41   :  { %414 = vmatprep.subr.bf16.mxu1 %v515_v0  ;;  %431 = vmatpush3.bf16.msra.mxu0 %v460_v16 }
  0x42   :  { %432 = vmatprep.subr.bf16.mxu0 %v515_v0 }
  0x44   :  { %415 = vmatpush3.bf16.msra.mxu1 %v454_v10 }
  0x45   :  { %433 = vmatpush3.bf16.msra.mxu0 %v461_v26 }
  0x46   :  { %434 = vmatprep.subr.bf16.mxu0 %v515_v0 }
  0x49   :  { %435 = vmatpush3.bf16.msra.mxu0 %v462_v27 }
  0xfe   :  { %v109_v18 = vpop.f32.mrb[0].mxu0 }
  0xff   :  { %v110_v19 = vadd.f32 %v353_v17, %v109_v18  ;;  %v398_v20 = vpop.f32.mrb[1].mxu0 }
 0x100   :  { %v112_v21 = vpop.f32.mrb[2].mxu0 }
 0x101   :  { %vm115_vm2 = vcmp.gt.f32.partialorder %v110_v19, 0.0  ;;  %v116_v22 = vmul.f32 0.01, %v110_v19  ;;  %v399_v23 = vpop.f32.mrb[3].mxu0 }
 0x103   :  { %v117_v24 = vsel %vm115_vm2, %v110_v19, %v116_v22 }
 0x104   :  { %v118_v25 = vpack.c.bf16 %v117_v24, %v117_v24 }
 0x106   :  { %417 = vmatmul.mubr.bf16.vlgmr.msra.gmra.mrb[0].mxu1 %v118_v25 }
 0x1d9   :  { %v224_v29 = vpop.f32.mrb[0].mxu1 }
 0x1da   :  { %v225_v30 = vadd.f32 %v356_v28, %v224_v29  ;;  %v418_v31 = vpop.f32.mrb[1].mxu1 }
 0x1db   :  { %v227_v32 = vpop.f32.mrb[2].mxu1 }
 0x1dc   :  { %vm230_vm3 = vcmp.gt.f32.partialorder %v225_v30, 0.0  ;;  %v231_v33 = vmul.f32 0.01, %v225_v30  ;;  %v419_v34 = vpop.f32.mrb[3].mxu1 }
 0x1de   :  { %v232_v35 = vsel %vm230_vm3, %v225_v30, %v231_v33 }
 0x1df   :  { %v233_v36 = vpack.c.bf16 %v232_v35, %v232_v35 }
 0x1e1   :  { %437 = vmatmul.mubr.bf16.vlgmr.msra.gmra.mrb[4].mxu0 %v233_v36 }
 0x2b4   :  { %v339_v38 = vpop.f32.mrb[4].mxu0 }
 0x2b5   :  { %v340_v39 = vadd.f32 %v365_v37, %v339_v38  ;;  %v438_v40 = vpop.f32.mrb[5].mxu0 }
 0x2b6   :  { %v342_v41 = vpop.f32.mrb[6].mxu0 }
 0x2b7   :  { %346 = vst.msk [vmem:[%s626_s7] sm:$0xff] %vm345_vm4, %v340_v39  ;;  %v439_v42 = vpop.f32.mrb[7].mxu0 }
 0x2b8   :  { %351 = vsyncpa [#allocation3], 1 }
 0x2b9   :  { %352 = vsyncpa [#allocation5], 1 }

</bundles_post_ra>
